<compile_context>
chip_gen: v5e
topology: v5e:2x2
jax: 0.10.0
libtpu: 0.0.40
codegen_flags: <defaults>
</compile_context>

<pallas_src>
import jax
import jax.numpy as jnp
from jax import lax
from jax.experimental import pallas as pl
from jax.experimental.pallas import tpu as pltpu


def bigru_head_kernel(tmax_ref,                       # SMEM: per-tile loop bound (scalar prefetch)
                      hs_ref, mask_ref,
                      w_in_ref, b_in_ref,
                      whh_f_ref, whh_b_ref,
                      bhhn_f_ref, bhhn_b_ref,
                      wcls_f_ref, wcls_b_ref, bcls_ref,
                      out_ref,
                      gi_f_ref, gi_b_ref):
    TB, T, H = hs_ref.shape          # hs tile: (batch_tile, T, H)
    H3 = 3 * H

    # ---- Phase 1: hoisted input projection (cuDNN-style GRU optimization). ----
    # One (T, H) @ (H, 6H) matmul per sequence (M = T, not M = B), covering both
    # directions.  b_ih (all gates) and b_hh (r, z gates) are pre-folded into
    # b_in; the n-gate hh bias must stay inside r * (...) and is added in the
    # recurrence.  Gates are staged in f32 VMEM scratch, read per step with a
    # cheap leading-axis index.
    w_in = w_in_ref[...]             # (H, 6H), matmul dtype (bf16 or f32)
    b_in = b_in_ref[...]             # (1, 6H), f32
    for b in range(TB):              # TB is static -> unrolled, fully pipelined with the DMA
        proj = jnp.dot(hs_ref[b], w_in,
                       preferred_element_type=jnp.float32) + b_in      # (T, 6H)
        gi_f_ref[:, b, :] = proj[:, :H3]
        gi_b_ref[:, b, :] = proj[:, H3:]

    whh_f = whh_f_ref[...]           # (H, 3H) pre-transposed
    whh_b = whh_b_ref[...]
    bhhn_f = bhhn_f_ref[...]         # (1, H) f32 (n-gate hh bias)
    bhhn_b = bhhn_b_ref[...]
    cdt = whh_f.dtype                # matmul operand dtype

    def gru_step(gi, h, m, whh, bhhn):
        # gi: (TB, 3H) f32 precomputed gates; h: (TB, H) f32; m: (TB, 1) f32.
        gh = jnp.dot(h.astype(cdt), whh, preferred_element_type=jnp.float32)
        r = jax.nn.sigmoid(gi[:, :H] + gh[:, :H])
        zc = jax.nn.sigmoid(-(gi[:, H:2 * H] + gh[:, H:2 * H]))   # = 1 - z, via EUP
        n = jnp.tanh(gi[:, 2 * H:] + r * (gh[:, 2 * H:] + bhhn))
        # m == 1 -> (1 - z) * n + z * h ; m == 0 -> h (frozen padded step).
        return h + (m * zc) * (n - h)

    # ---- Phase 2: fused fwd + bwd recurrence, dynamic trip count. -------------
    # Only max(valid length in tile) steps are executed.  For right-padded
    # sequences this is exactly equivalent to running all T steps, because
    # padded steps (mask == 0) leave h unchanged bit-exactly.
    t_max = tmax_ref[pl.program_id(0)]

    def body(i, carry):
        h_f, h_b = carry
        tr = t_max - 1 - i
        h_f = gru_step(gi_f_ref[i], h_f, mask_ref[i], whh_f, bhhn_f)
        h_b = gru_step(gi_b_ref[tr], h_b, mask_ref[tr], whh_b, bhhn_b)
        return h_f, h_b

    h0 = jnp.zeros((TB, H), jnp.float32)
    h_f, h_b = lax.fori_loop(0, t_max, body, (h0, h0))

    # ---- Phase 3: classifier = VPU mul + lane reduce (no concat, no N=1 MXU). -
    out_ref[...] = (jnp.sum(h_f * wcls_f_ref[...], axis=-1, keepdims=True)
                    + jnp.sum(h_b * wcls_b_ref[...], axis=-1, keepdims=True)
                    + bcls_ref[...])


def _prepare_kernel_params(raw, matmul_dtype):
    """Pre-transpose / fuse PyTorch-layout GRU + classifier params for the kernel."""
    H = raw["w_hh_f"].shape[1]

    def fold_bias(b_ih, b_hh):
        # Fold b_ih (all gates) and b_hh (r, z only) into the precomputed gates.
        return b_ih + jnp.concatenate([b_hh[:2 * H], jnp.zeros((H,), jnp.float32)])

    w_in = jnp.concatenate([raw["w_ih_f"].T, raw["w_ih_b"].T], axis=1)      # (H, 6H)
    b_in = jnp.concatenate([fold_bias(raw["b_ih_f"], raw["b_hh_f"]),
                            fold_bias(raw["b_ih_b"], raw["b_hh_b"])])[None, :]
    return dict(
        w_in=w_in.astype(matmul_dtype),
        b_in=b_in.astype(jnp.float32),
        whh_f=raw["w_hh_f"].T.astype(matmul_dtype),                         # (H, 3H)
        whh_b=raw["w_hh_b"].T.astype(matmul_dtype),
        bhhn_f=raw["b_hh_f"][2 * H:][None, :].astype(jnp.float32),          # (1, H)
        bhhn_b=raw["b_hh_b"][2 * H:][None, :].astype(jnp.float32),
        wcls_f=raw["w_cls"][:, :H].astype(jnp.float32),                     # (1, H)
        wcls_b=raw["w_cls"][:, H:].astype(jnp.float32),
        bcls=raw["b_cls"].reshape(1, 1).astype(jnp.float32),
    )


def finetune_head_forward(hidden_states, attention_mask, raw_params, *,
                          batch_tile=None, matmul_dtype=jnp.bfloat16):
    """hidden_states: (B, T, H) f32; attention_mask: (B, T) 0/1 (right-padded)."""
    B, T, H = hidden_states.shape
    H3, H6 = 3 * H, 6 * H

    if batch_tile is None or batch_tile >= B:
        tb = B
    else:
        tb = batch_tile
        if B % tb != 0 or tb % 8 != 0:
            raise ValueError("batch_tile must divide B and be a multiple of 8 "
                             "(TPU sublane tiling) unless it equals B")
    n_tiles = B // tb
    # VMEM per grid step ~ 2 * (tb*T*H*itemsize) [double-buffered hs tile]
    #                    + 2 * (T*tb*3H*4)       [gate scratch]
    # Pick tb so this stays under vmem_limit_bytes (tighter on v7x: 64 MiB phys).

    p = _prepare_kernel_params(raw_params, matmul_dtype)
    hs = hidden_states.astype(matmul_dtype)                       # (B, T, H), natural layout
    mask_tm = jnp.transpose(attention_mask.astype(jnp.float32), (1, 0))[:, :, None]  # (T, B, 1)

    # Per-tile dynamic trip count = 1 + last valid index, maxed over the tile.
    # (Equals max sequence length for right-padded masks; robust for holes too,
    # so truncation is exactly equivalent to the full-T freeze emulation.)
    pos = jnp.arange(T, dtype=jnp.int32)[None, :]
    valid_upto = jnp.max(jnp.where(attention_mask > 0, pos + 1, 0), axis=1)
    tile_tmax = jnp.max(valid_upto.reshape(n_tiles, tb), axis=1).astype(jnp.int32)

    def full_spec(shape):
        zero = (0,) * len(shape)
        return pl.BlockSpec(shape, lambda i, tmax, _z=zero: _z)

    grid_spec = pltpu.PrefetchScalarGridSpec(
        num_scalar_prefetch=1,                               # tile_tmax -> SMEM
        grid=(n_tiles,),
        in_specs=[
            pl.BlockSpec((tb, T, H), lambda i, tmax: (i, 0, 0)),   # hidden_states tile
            pl.BlockSpec((T, tb, 1), lambda i, tmax: (0, i, 0)),   # time-major mask tile
            full_spec((H, H6)),    # w_in (fused, pre-transposed input projection)
            full_spec((1, H6)),    # b_in (folded biases)
            full_spec((H, H3)),    # w_hh forward (pre-transposed)
            full_spec((H, H3)),    # w_hh backward
            full_spec((1, H)),     # b_hh n-gate forward
            full_spec((1, H)),     # b_hh n-gate backward
            full_spec((1, H)),     # classifier weight, forward half
            full_spec((1, H)),     # classifier weight, backward half
            full_spec((1, 1)),     # classifier bias
        ],
        out_specs=pl.BlockSpec((tb, 1), lambda i, tmax: (i, 0)),
        scratch_shapes=[pltpu.VMEM((T, tb, H3), jnp.float32),   # precomputed fwd gates
                        pltpu.VMEM((T, tb, H3), jnp.float32)],  # precomputed bwd gates
    )

    itemsize = jnp.dtype(matmul_dtype).itemsize
    weight_bytes = (H * H6 + 2 * H * H3) * itemsize + (H6 + 4 * H + 1) * 4
    cost = pl.CostEstimate(
        flops=24 * B * T * H * H,            # input projection + 2x hh recurrence
        transcendentals=6 * B * T * H,       # 2 sigmoid + 1 tanh per dir per step
        bytes_accessed=B * T * H * itemsize + T * B * 4
                       + n_tiles * weight_bytes + B * 4,
    )

    return pl.pallas_call(
        bigru_head_kernel,
        out_shape=jax.ShapeDtypeStruct((B, 1), jnp.float32),
        grid_spec=grid_spec,
        compiler_params=pltpu.CompilerParams(
            dimension_semantics=("parallel",),
            vmem_limit_bytes=32 * 1024 * 1024),
        cost_estimate=cost,
    )(tile_tmax, hs, mask_tm, p["w_in"], p["b_in"], p["whh_f"], p["whh_b"],
      p["bhhn_f"], p["bhhn_b"], p["wcls_f"], p["wcls_b"], p["bcls"])


def init_params(key, H):
    """Raw parameters in PyTorch layout (gate order [r, z, n])."""
    ks = jax.random.split(key, 12)
    s = 0.1
    return {
        # nn.GRU direction 0 (forward)
        "w_ih_f": s * jax.random.normal(ks[0], (3 * H, H), jnp.float32),
        "w_hh_f": s * jax.random.normal(ks[1], (3 * H, H), jnp.float32),
        "b_ih_f": s * jax.random.normal(ks[2], (3 * H,), jnp.float32),
        "b_hh_f": s * jax.random.normal(ks[3], (3 * H,), jnp.float32),
        # nn.GRU direction 1 (reverse)
        "w_ih_b": s * jax.random.normal(ks[4], (3 * H, H), jnp.float32),
        "w_hh_b": s * jax.random.normal(ks[5], (3 * H, H), jnp.float32),
        "b_ih_b": s * jax.random.normal(ks[6], (3 * H,), jnp.float32),
        "b_hh_b": s * jax.random.normal(ks[7], (3 * H,), jnp.float32),
        # BiGRU.classifier: Linear(2H -> 1)
        "w_cls": s * jax.random.normal(ks[8], (1, 2 * H), jnp.float32),
        "b_cls": s * jax.random.normal(ks[9], (1,), jnp.float32),
        # Unused FineTuneHead.classifier Linear(H -> 1) (never applied in forward)
        "w_unused": s * jax.random.normal(ks[10], (1, H), jnp.float32),
        "b_unused": s * jax.random.normal(ks[11], (1,), jnp.float32),
    }


def _reference_forward(hidden_states, attention_mask, raw, matmul_dtype=jnp.float32):
    """Pure-JAX reference of the masked BiGRU pooling + classifier (PyTorch layout),
    mirroring the kernel's matmul-operand dtype policy."""
    B, T, H = hidden_states.shape
    mask = attention_mask.astype(jnp.float32)
    xs = jnp.transpose(hidden_states, (1, 0, 2))          # (T, B, H)
    ms = jnp.transpose(mask, (1, 0))[:, :, None]          # (T, B, 1)

    def run_dir(xs_t, ms_t, w_ih, w_hh, b_ih, b_hh):
        w_ih_c = w_ih.astype(matmul_dtype)
        w_hh_c = w_hh.astype(matmul_dtype)

        def step(h, inp):
            x_t, m_t = inp
            gi = jnp.dot(x_t.astype(matmul_dtype), w_ih_c.T,
                         preferred_element_type=jnp.float32) + b_ih
            gh = jnp.dot(h.astype(matmul_dtype), w_hh_c.T,
                         preferred_element_type=jnp.float32) + b_hh
            r = jax.nn.sigmoid(gi[:, :H] + gh[:, :H])
            z = jax.nn.sigmoid(gi[:, H:2 * H] + gh[:, H:2 * H])
            n = jnp.tanh(gi[:, 2 * H:] + r * gh[:, 2 * H:])
            h_new = (1.0 - z) * n + z * h
            return h + m_t * (h_new - h), None

        h0 = jnp.zeros((B, H), jnp.float32)
        h_last, _ = lax.scan(step, h0, (xs_t, ms_t))
        return h_last

    h_f = run_dir(xs, ms, raw["w_ih_f"], raw["w_hh_f"], raw["b_ih_f"], raw["b_hh_f"])
    h_b = run_dir(xs[::-1], ms[::-1], raw["w_ih_b"], raw["w_hh_b"],
                  raw["b_ih_b"], raw["b_hh_b"])
    pooled = jnp.concatenate([h_f, h_b], axis=-1)
    return pooled @ raw["w_cls"].T + raw["b_cls"][None, :]


if __name__ == "__main__":
    B, T, H = 2, 8, 32
    key = jax.random.PRNGKey(0)
    k_x, k_p = jax.random.split(key)

    hidden_states = jax.random.normal(k_x, (B, T, H), jnp.float32)
    # Right-padded (prefix) attention mask, lengths = [6, 5] — matches the
    # pack_padded_sequence(lengths = mask.sum(1)) contract of the PyTorch module
    # and exercises the dynamic (truncated) trip count.
    # TODO(synk): masks with holes / left padding are outside the PyTorch module's
    # own contract and are not supported here either.
    lengths = jnp.array([6, 5], dtype=jnp.int32)
    attention_mask = (jnp.arange(T)[None, :] < lengths[:, None]).astype(jnp.int32)

    raw_params = init_params(k_p, H)

    # Full-precision path: tight check against the pure-JAX reference.
    out_f32 = finetune_head_forward(hidden_states, attention_mask, raw_params,
                                    matmul_dtype=jnp.float32)
    out_f32 = jax.block_until_ready(out_f32)
    ref_f32 = _reference_forward(hidden_states, attention_mask, raw_params,
                                 matmul_dtype=jnp.float32)
    assert out_f32.shape == (B, 1)
    assert jnp.allclose(out_f32, ref_f32, atol=1e-4, rtol=1e-4)

    # bf16-MXU-operand path (production default on v6e/v7x): looser tolerance.
    out_bf16 = finetune_head_forward(hidden_states, attention_mask, raw_params,
                                     matmul_dtype=jnp.bfloat16)
    out_bf16 = jax.block_until_ready(out_bf16)
    ref_bf16 = _reference_forward(hidden_states, attention_mask, raw_params,
                                  matmul_dtype=jnp.bfloat16)
    assert out_bf16.shape == (B, 1)
    assert jnp.allclose(out_bf16, ref_bf16, atol=2e-2, rtol=2e-2)

    print("KERNEL_OK")
</pallas_src>

<mosaic_0001>
module attributes {stable_mosaic.version = 11 : i64} {
  func.func @bigru_head_kernel(%arg0: i32, %arg1: memref<1xi32, #tpu.memory_space<smem>>, %arg2: memref<2x8x32xf32, #tpu.memory_space<vmem>>, %arg3: memref<8x2x1xf32, #tpu.memory_space<vmem>>, %arg4: memref<32x192xf32, #tpu.memory_space<vmem>>, %arg5: memref<1x192xf32, #tpu.memory_space<vmem>>, %arg6: memref<32x96xf32, #tpu.memory_space<vmem>>, %arg7: memref<32x96xf32, #tpu.memory_space<vmem>>, %arg8: memref<1x32xf32, #tpu.memory_space<vmem>>, %arg9: memref<1x32xf32, #tpu.memory_space<vmem>>, %arg10: memref<1x32xf32, #tpu.memory_space<vmem>>, %arg11: memref<1x32xf32, #tpu.memory_space<vmem>>, %arg12: memref<1x1xf32, #tpu.memory_space<vmem>>, %arg13: memref<2x1xf32, #tpu.memory_space<vmem>>, %arg14: memref<8x2x96xf32, #tpu.memory_space<vmem>>, %arg15: memref<8x2x96xf32, #tpu.memory_space<vmem>>) attributes {dimension_semantics = [#tpu.dimension_semantics<parallel>], iteration_bounds = array<i64: 1>, scalar_prefetch = 1 : i64, scratch_operands = 2 : i64, tpu.core_type = #tpu.core_type<tc>, window_params = [{transform_indices = @transform_0, window_bounds = array<i64: 2, 8, 32>}, {transform_indices = @transform_1, window_bounds = array<i64: 8, 2, 1>}, {pipeline_mode = #tpu.pipeline_mode<synchronous>, transform_indices = @transform_2, window_bounds = array<i64: 32, 192>}, {pipeline_mode = #tpu.pipeline_mode<synchronous>, transform_indices = @transform_3, window_bounds = array<i64: 1, 192>}, {pipeline_mode = #tpu.pipeline_mode<synchronous>, transform_indices = @transform_4, window_bounds = array<i64: 32, 96>}, {pipeline_mode = #tpu.pipeline_mode<synchronous>, transform_indices = @transform_5, window_bounds = array<i64: 32, 96>}, {pipeline_mode = #tpu.pipeline_mode<synchronous>, transform_indices = @transform_6, window_bounds = array<i64: 1, 32>}, {pipeline_mode = #tpu.pipeline_mode<synchronous>, transform_indices = @transform_7, window_bounds = array<i64: 1, 32>}, {pipeline_mode = #tpu.pipeline_mode<synchronous>, transform_indices = @transform_8, window_bounds = array<i64: 1, 32>}, {pipeline_mode = #tpu.pipeline_mode<synchronous>, transform_indices = @transform_9, window_bounds = array<i64: 1, 32>}, {pipeline_mode = #tpu.pipeline_mode<synchronous>, transform_indices = @transform_10, window_bounds = array<i64: 1, 1>}, {transform_indices = @transform_11, window_bounds = array<i64: 2, 1>}]} {
    %c0 = arith.constant 0 : index
    %c0_0 = arith.constant 0 : index
    %0 = vector.load %arg4[%c0, %c0_0] : memref<32x192xf32, #tpu.memory_space<vmem>>, vector<32x192xf32>
    %c0_1 = arith.constant 0 : index
    %c0_2 = arith.constant 0 : index
    %1 = vector.load %arg5[%c0_1, %c0_2] : memref<1x192xf32, #tpu.memory_space<vmem>>, vector<1x192xf32>
    %c0_3 = arith.constant 0 : index
    %c0_4 = arith.constant 0 : index
    %c0_5 = arith.constant 0 : index
    %2 = vector.load %arg2[%c0_3, %c0_4, %c0_5] : memref<2x8x32xf32, #tpu.memory_space<vmem>>, vector<1x8x32xf32>
    %3 = vector.shape_cast %2 : vector<1x8x32xf32> to vector<8x32xf32>
    %cst = arith.constant dense<0.000000e+00> : vector<8x192xf32>
    %4 = tpu.matmul %3, %0, %cst {dimension_numbers = #tpu.dot_dimension_numbers<[1], [0], [0], [1], [0, 0, 1, 1], [], []>} : vector<8x32xf32>, vector<32x192xf32>, vector<8x192xf32> -> vector<8x192xf32>
    %5 = vector.broadcast %1 : vector<1x192xf32> to vector<8x192xf32>
    %6 = arith.addf %4, %5 : vector<8x192xf32>
    %7 = vector.extract_strided_slice %6 {offsets = [0, 0], sizes = [8, 96], strides = [1, 1]} : vector<8x192xf32> to vector<8x96xf32>
    %c0_6 = arith.constant 0 : index
    %c0_7 = arith.constant 0 : index
    %c0_8 = arith.constant 0 : index
    %8 = vector.load %arg14[%c0_6, %c0_7, %c0_8] : memref<8x2x96xf32, #tpu.memory_space<vmem>>, vector<8x1x96xf32>
    %9 = vector.shape_cast %8 : vector<8x1x96xf32> to vector<8x96xf32>
    %10 = vector.shape_cast %7 : vector<8x96xf32> to vector<8x1x96xf32>
    tpu.vector_store %arg14[%c0_6, %c0_7, %c0_8], %10 {strides = array<i32>} : memref<8x2x96xf32, #tpu.memory_space<vmem>>, vector<8x1x96xf32>,
    %11 = vector.extract_strided_slice %6 {offsets = [0, 96], sizes = [8, 96], strides = [1, 1]} : vector<8x192xf32> to vector<8x96xf32>
    %c0_9 = arith.constant 0 : index
    %c0_10 = arith.constant 0 : index
    %c0_11 = arith.constant 0 : index
    %12 = vector.load %arg15[%c0_9, %c0_10, %c0_11] : memref<8x2x96xf32, #tpu.memory_space<vmem>>, vector<8x1x96xf32>
    %13 = vector.shape_cast %12 : vector<8x1x96xf32> to vector<8x96xf32>
    %14 = vector.shape_cast %11 : vector<8x96xf32> to vector<8x1x96xf32>
    tpu.vector_store %arg15[%c0_9, %c0_10, %c0_11], %14 {strides = array<i32>} : memref<8x2x96xf32, #tpu.memory_space<vmem>>, vector<8x1x96xf32>,
    %c1 = arith.constant 1 : index
    %c0_12 = arith.constant 0 : index
    %c0_13 = arith.constant 0 : index
    %15 = vector.load %arg2[%c1, %c0_12, %c0_13] : memref<2x8x32xf32, #tpu.memory_space<vmem>>, vector<1x8x32xf32>
    %16 = vector.shape_cast %15 : vector<1x8x32xf32> to vector<8x32xf32>
    %cst_14 = arith.constant dense<0.000000e+00> : vector<8x192xf32>
    %17 = tpu.matmul %16, %0, %cst_14 {dimension_numbers = #tpu.dot_dimension_numbers<[1], [0], [0], [1], [0, 0, 1, 1], [], []>} : vector<8x32xf32>, vector<32x192xf32>, vector<8x192xf32> -> vector<8x192xf32>
    %18 = vector.broadcast %1 : vector<1x192xf32> to vector<8x192xf32>
    %19 = arith.addf %17, %18 : vector<8x192xf32>
    %20 = vector.extract_strided_slice %19 {offsets = [0, 0], sizes = [8, 96], strides = [1, 1]} : vector<8x192xf32> to vector<8x96xf32>
    %c0_15 = arith.constant 0 : index
    %c1_16 = arith.constant 1 : index
    %c0_17 = arith.constant 0 : index
    %21 = vector.load %arg14[%c0_15, %c1_16, %c0_17] : memref<8x2x96xf32, #tpu.memory_space<vmem>>, vector<8x1x96xf32>
    %22 = vector.shape_cast %21 : vector<8x1x96xf32> to vector<8x96xf32>
    %23 = vector.shape_cast %20 : vector<8x96xf32> to vector<8x1x96xf32>
    tpu.vector_store %arg14[%c0_15, %c1_16, %c0_17], %23 {strides = array<i32>} : memref<8x2x96xf32, #tpu.memory_space<vmem>>, vector<8x1x96xf32>,
    %24 = vector.extract_strided_slice %19 {offsets = [0, 96], sizes = [8, 96], strides = [1, 1]} : vector<8x192xf32> to vector<8x96xf32>
    %c0_18 = arith.constant 0 : index
    %c1_19 = arith.constant 1 : index
    %c0_20 = arith.constant 0 : index
    %25 = vector.load %arg15[%c0_18, %c1_19, %c0_20] : memref<8x2x96xf32, #tpu.memory_space<vmem>>, vector<8x1x96xf32>
    %26 = vector.shape_cast %25 : vector<8x1x96xf32> to vector<8x96xf32>
    %27 = vector.shape_cast %24 : vector<8x96xf32> to vector<8x1x96xf32>
    tpu.vector_store %arg15[%c0_18, %c1_19, %c0_20], %27 {strides = array<i32>} : memref<8x2x96xf32, #tpu.memory_space<vmem>>, vector<8x1x96xf32>,
    %c0_21 = arith.constant 0 : index
    %c0_22 = arith.constant 0 : index
    %28 = vector.load %arg6[%c0_21, %c0_22] : memref<32x96xf32, #tpu.memory_space<vmem>>, vector<32x96xf32>
    %c0_23 = arith.constant 0 : index
    %c0_24 = arith.constant 0 : index
    %29 = vector.load %arg7[%c0_23, %c0_24] : memref<32x96xf32, #tpu.memory_space<vmem>>, vector<32x96xf32>
    %c0_25 = arith.constant 0 : index
    %c0_26 = arith.constant 0 : index
    %30 = vector.load %arg8[%c0_25, %c0_26] : memref<1x32xf32, #tpu.memory_space<vmem>>, vector<1x32xf32>
    %c0_27 = arith.constant 0 : index
    %c0_28 = arith.constant 0 : index
    %31 = vector.load %arg9[%c0_27, %c0_28] : memref<1x32xf32, #tpu.memory_space<vmem>>, vector<1x32xf32>
    %32 = arith.index_cast %arg0 : i32 to index
    %33 = memref.load %arg1[%32] : memref<1xi32, #tpu.memory_space<smem>>
    %cst_29 = arith.constant 0.000000e+00 : f32
    %34 = vector.broadcast %cst_29 : f32 to vector<2x32xf32>
    %c0_i32 = arith.constant 0 : i32
    %35 = arith.subi %33, %c0_i32 : i32
    %36 = arith.addi %c0_i32, %35 : i32
    %c1_i32 = arith.constant 1 : i32
    %37:2 = scf.for %arg16 = %c0_i32 to %36 step %c1_i32 iter_args(%arg17 = %34, %arg18 = %34) -> (vector<2x32xf32>, vector<2x32xf32>)  : i32 {
      %c1_i32_40 = arith.constant 1 : i32
      %53 = arith.subi %33, %c1_i32_40 : i32
      %54 = arith.subi %53, %arg16 : i32
      %55 = arith.index_cast %arg16 : i32 to index
      %c0_41 = arith.constant 0 : index
      %c0_42 = arith.constant 0 : index
      %56 = vector.load %arg14[%55, %c0_41, %c0_42] : memref<8x2x96xf32, #tpu.memory_space<vmem>>, vector<1x2x96xf32>
      %57 = vector.shape_cast %56 : vector<1x2x96xf32> to vector<2x96xf32>
      %58 = arith.index_cast %arg16 : i32 to index
      %c0_43 = arith.constant 0 : index
      %c0_44 = arith.constant 0 : index
      %59 = vector.load %arg3[%58, %c0_43, %c0_44] : memref<8x2x1xf32, #tpu.memory_space<vmem>>, vector<1x2x1xf32>
      %60 = vector.shape_cast %59 : vector<1x2x1xf32> to vector<2x1xf32>
      %cst_45 = arith.constant dense<0.000000e+00> : vector<2x96xf32>
      %61 = tpu.matmul %arg17, %28, %cst_45 {dimension_numbers = #tpu.dot_dimension_numbers<[1], [0], [0], [1], [0, 0, 1, 1], [], []>} : vector<2x32xf32>, vector<32x96xf32>, vector<2x96xf32> -> vector<2x96xf32>
      %62 = vector.extract_strided_slice %57 {offsets = [0, 0], sizes = [2, 32], strides = [1, 1]} : vector<2x96xf32> to vector<2x32xf32>
      %63 = vector.extract_strided_slice %61 {offsets = [0, 0], sizes = [2, 32], strides = [1, 1]} : vector<2x96xf32> to vector<2x32xf32>
      %64 = arith.addf %62, %63 : vector<2x32xf32>
      %65 = arith.negf %64 : vector<2x32xf32>
      %66 = math.exp %65 : vector<2x32xf32>
      %cst_46 = arith.constant 1.000000e+00 : f32
      %67 = vector.broadcast %cst_46 : f32 to vector<2x32xf32>
      %68 = arith.addf %67, %66 : vector<2x32xf32>
      %69 = arith.divf %67, %68 : vector<2x32xf32>
      %70 = vector.extract_strided_slice %57 {offsets = [0, 32], sizes = [2, 32], strides = [1, 1]} : vector<2x96xf32> to vector<2x32xf32>
      %71 = vector.extract_strided_slice %61 {offsets = [0, 32], sizes = [2, 32], strides = [1, 1]} : vector<2x96xf32> to vector<2x32xf32>
      %72 = arith.addf %70, %71 : vector<2x32xf32>
      %cst_47 = arith.constant 0.000000e+00 : f32
      %73 = vector.broadcast %cst_47 : f32 to vector<2x32xf32>
      %74 = arith.subf %73, %72 : vector<2x32xf32>
      %75 = arith.negf %74 : vector<2x32xf32>
      %76 = math.exp %75 : vector<2x32xf32>
      %cst_48 = arith.constant 1.000000e+00 : f32
      %77 = vector.broadcast %cst_48 : f32 to vector<2x32xf32>
      %78 = arith.addf %77, %76 : vector<2x32xf32>
      %79 = arith.divf %77, %78 : vector<2x32xf32>
      %80 = vector.extract_strided_slice %57 {offsets = [0, 64], sizes = [2, 32], strides = [1, 1]} : vector<2x96xf32> to vector<2x32xf32>
      %81 = vector.extract_strided_slice %61 {offsets = [0, 64], sizes = [2, 32], strides = [1, 1]} : vector<2x96xf32> to vector<2x32xf32>
      %82 = vector.broadcast %30 : vector<1x32xf32> to vector<2x32xf32>
      %83 = arith.addf %81, %82 : vector<2x32xf32>
      %84 = arith.mulf %69, %83 : vector<2x32xf32>
      %85 = arith.addf %80, %84 : vector<2x32xf32>
      %86 = math.tanh %85 : vector<2x32xf32>
      %87 = vector.broadcast %60 : vector<2x1xf32> to vector<2x32xf32>
      %88 = arith.mulf %87, %79 : vector<2x32xf32>
      %89 = arith.subf %86, %arg17 : vector<2x32xf32>
      %90 = arith.mulf %88, %89 : vector<2x32xf32>
      %91 = arith.addf %arg17, %90 : vector<2x32xf32>
      %92 = arith.index_cast %54 : i32 to index
      %c0_49 = arith.constant 0 : index
      %c0_50 = arith.constant 0 : index
      %93 = vector.load %arg15[%92, %c0_49, %c0_50] : memref<8x2x96xf32, #tpu.memory_space<vmem>>, vector<1x2x96xf32>
      %94 = vector.shape_cast %93 : vector<1x2x96xf32> to vector<2x96xf32>
      %95 = arith.index_cast %54 : i32 to index
      %c0_51 = arith.constant 0 : index
      %c0_52 = arith.constant 0 : index
      %96 = vector.load %arg3[%95, %c0_51, %c0_52] : memref<8x2x1xf32, #tpu.memory_space<vmem>>, vector<1x2x1xf32>
      %97 = vector.shape_cast %96 : vector<1x2x1xf32> to vector<2x1xf32>
      %cst_53 = arith.constant dense<0.000000e+00> : vector<2x96xf32>
      %98 = tpu.matmul %arg18, %29, %cst_53 {dimension_numbers = #tpu.dot_dimension_numbers<[1], [0], [0], [1], [0, 0, 1, 1], [], []>} : vector<2x32xf32>, vector<32x96xf32>, vector<2x96xf32> -> vector<2x96xf32>
      %99 = vector.extract_strided_slice %94 {offsets = [0, 0], sizes = [2, 32], strides = [1, 1]} : vector<2x96xf32> to vector<2x32xf32>
      %100 = vector.extract_strided_slice %98 {offsets = [0, 0], sizes = [2, 32], strides = [1, 1]} : vector<2x96xf32> to vector<2x32xf32>
      %101 = arith.addf %99, %100 : vector<2x32xf32>
      %102 = arith.negf %101 : vector<2x32xf32>
      %103 = math.exp %102 : vector<2x32xf32>
      %cst_54 = arith.constant 1.000000e+00 : f32
      %104 = vector.broadcast %cst_54 : f32 to vector<2x32xf32>
      %105 = arith.addf %104, %103 : vector<2x32xf32>
      %106 = arith.divf %104, %105 : vector<2x32xf32>
      %107 = vector.extract_strided_slice %94 {offsets = [0, 32], sizes = [2, 32], strides = [1, 1]} : vector<2x96xf32> to vector<2x32xf32>
      %108 = vector.extract_strided_slice %98 {offsets = [0, 32], sizes = [2, 32], strides = [1, 1]} : vector<2x96xf32> to vector<2x32xf32>
      %109 = arith.addf %107, %108 : vector<2x32xf32>
      %cst_55 = arith.constant 0.000000e+00 : f32
      %110 = vector.broadcast %cst_55 : f32 to vector<2x32xf32>
      %111 = arith.subf %110, %109 : vector<2x32xf32>
      %112 = arith.negf %111 : vector<2x32xf32>
      %113 = math.exp %112 : vector<2x32xf32>
      %cst_56 = arith.constant 1.000000e+00 : f32
      %114 = vector.broadcast %cst_56 : f32 to vector<2x32xf32>
      %115 = arith.addf %114, %113 : vector<2x32xf32>
      %116 = arith.divf %114, %115 : vector<2x32xf32>
      %117 = vector.extract_strided_slice %94 {offsets = [0, 64], sizes = [2, 32], strides = [1, 1]} : vector<2x96xf32> to vector<2x32xf32>
      %118 = vector.extract_strided_slice %98 {offsets = [0, 64], sizes = [2, 32], strides = [1, 1]} : vector<2x96xf32> to vector<2x32xf32>
      %119 = vector.broadcast %31 : vector<1x32xf32> to vector<2x32xf32>
      %120 = arith.addf %118, %119 : vector<2x32xf32>
      %121 = arith.mulf %106, %120 : vector<2x32xf32>
      %122 = arith.addf %117, %121 : vector<2x32xf32>
      %123 = math.tanh %122 : vector<2x32xf32>
      %124 = vector.broadcast %97 : vector<2x1xf32> to vector<2x32xf32>
      %125 = arith.mulf %124, %116 : vector<2x32xf32>
      %126 = arith.subf %123, %arg18 : vector<2x32xf32>
      %127 = arith.mulf %125, %126 : vector<2x32xf32>
      %128 = arith.addf %arg18, %127 : vector<2x32xf32>
      scf.yield %91, %128 : vector<2x32xf32>, vector<2x32xf32>
    }
    %c0_30 = arith.constant 0 : index
    %c0_31 = arith.constant 0 : index
    %38 = vector.load %arg10[%c0_30, %c0_31] : memref<1x32xf32, #tpu.memory_space<vmem>>, vector<1x32xf32>
    %39 = vector.broadcast %38 : vector<1x32xf32> to vector<2x32xf32>
    %40 = arith.mulf %37#0, %39 : vector<2x32xf32>
    %cst_32 = arith.constant dense<0.000000e+00> : vector<2xf32>
    %41 = vector.multi_reduction <add>, %40, %cst_32 [1] : vector<2x32xf32> to vector<2xf32>
    %42 = vector.shape_cast %41 : vector<2xf32> to vector<2x1xf32>
    %c0_33 = arith.constant 0 : index
    %c0_34 = arith.constant 0 : index
    %43 = vector.load %arg11[%c0_33, %c0_34] : memref<1x32xf32, #tpu.memory_space<vmem>>, vector<1x32xf32>
    %44 = vector.broadcast %43 : vector<1x32xf32> to vector<2x32xf32>
    %45 = arith.mulf %37#1, %44 : vector<2x32xf32>
    %cst_35 = arith.constant dense<0.000000e+00> : vector<2xf32>
    %46 = vector.multi_reduction <add>, %45, %cst_35 [1] : vector<2x32xf32> to vector<2xf32>
    %47 = vector.shape_cast %46 : vector<2xf32> to vector<2x1xf32>
    %48 = arith.addf %42, %47 : vector<2x1xf32>
    %c0_36 = arith.constant 0 : index
    %c0_37 = arith.constant 0 : index
    %49 = vector.load %arg12[%c0_36, %c0_37] : memref<1x1xf32, #tpu.memory_space<vmem>>, vector<1x1xf32>
    %50 = vector.broadcast %49 : vector<1x1xf32> to vector<2x1xf32>
    %51 = arith.addf %48, %50 : vector<2x1xf32>
    %c0_38 = arith.constant 0 : index
    %c0_39 = arith.constant 0 : index
    %52 = vector.load %arg13[%c0_38, %c0_39] : memref<2x1xf32, #tpu.memory_space<vmem>>, vector<2x1xf32>
    tpu.vector_store %arg13[%c0_38, %c0_39], %51 {strides = array<i32>} : memref<2x1xf32, #tpu.memory_space<vmem>>, vector<2x1xf32>,
    return
  }
  func.func @transform_0(%arg0: i32, %arg1: memref<1xi32, #tpu.memory_space<smem>>) -> (i32, i32, i32) {
    %c0_i32 = arith.constant 0 : i32
    %c0_i32_0 = arith.constant 0 : i32
    %c0_i32_1 = arith.constant 0 : i32
    return %arg0, %c0_i32, %c0_i32_0 : i32, i32, i32
  }
  func.func @transform_1(%arg0: i32, %arg1: memref<1xi32, #tpu.memory_space<smem>>) -> (i32, i32, i32) {
    %c0_i32 = arith.constant 0 : i32
    %c0_i32_0 = arith.constant 0 : i32
    %c0_i32_1 = arith.constant 0 : i32
    return %c0_i32, %arg0, %c0_i32_0 : i32, i32, i32
  }
  func.func @transform_2(%arg0: i32, %arg1: memref<1xi32, #tpu.memory_space<smem>>) -> (i32, i32) {
    %c0_i32 = arith.constant 0 : i32
    %c0_i32_0 = arith.constant 0 : i32
    %c0_i32_1 = arith.constant 0 : i32
    return %c0_i32, %c0_i32_0 : i32, i32
  }
  func.func @transform_3(%arg0: i32, %arg1: memref<1xi32, #tpu.memory_space<smem>>) -> (i32, i32) {
    %c0_i32 = arith.constant 0 : i32
    %c0_i32_0 = arith.constant 0 : i32
    %c0_i32_1 = arith.constant 0 : i32
    return %c0_i32, %c0_i32_0 : i32, i32
  }
  func.func @transform_4(%arg0: i32, %arg1: memref<1xi32, #tpu.memory_space<smem>>) -> (i32, i32) {
    %c0_i32 = arith.constant 0 : i32
    %c0_i32_0 = arith.constant 0 : i32
    %c0_i32_1 = arith.constant 0 : i32
    return %c0_i32, %c0_i32_0 : i32, i32
  }
  func.func @transform_5(%arg0: i32, %arg1: memref<1xi32, #tpu.memory_space<smem>>) -> (i32, i32) {
    %c0_i32 = arith.constant 0 : i32
    %c0_i32_0 = arith.constant 0 : i32
    %c0_i32_1 = arith.constant 0 : i32
    return %c0_i32, %c0_i32_0 : i32, i32
  }
  func.func @transform_6(%arg0: i32, %arg1: memref<1xi32, #tpu.memory_space<smem>>) -> (i32, i32) {
    %c0_i32 = arith.constant 0 : i32
    %c0_i32_0 = arith.constant 0 : i32
    %c0_i32_1 = arith.constant 0 : i32
    return %c0_i32, %c0_i32_0 : i32, i32
  }
  func.func @transform_7(%arg0: i32, %arg1: memref<1xi32, #tpu.memory_space<smem>>) -> (i32, i32) {
    %c0_i32 = arith.constant 0 : i32
    %c0_i32_0 = arith.constant 0 : i32
    %c0_i32_1 = arith.constant 0 : i32
    return %c0_i32, %c0_i32_0 : i32, i32
  }
  func.func @transform_8(%arg0: i32, %arg1: memref<1xi32, #tpu.memory_space<smem>>) -> (i32, i32) {
    %c0_i32 = arith.constant 0 : i32
    %c0_i32_0 = arith.constant 0 : i32
    %c0_i32_1 = arith.constant 0 : i32
    return %c0_i32, %c0_i32_0 : i32, i32
  }
  func.func @transform_9(%arg0: i32, %arg1: memref<1xi32, #tpu.memory_space<smem>>) -> (i32, i32) {
    %c0_i32 = arith.constant 0 : i32
    %c0_i32_0 = arith.constant 0 : i32
    %c0_i32_1 = arith.constant 0 : i32
    return %c0_i32, %c0_i32_0 : i32, i32
  }
  func.func @transform_10(%arg0: i32, %arg1: memref<1xi32, #tpu.memory_space<smem>>) -> (i32, i32) {
    %c0_i32 = arith.constant 0 : i32
    %c0_i32_0 = arith.constant 0 : i32
    %c0_i32_1 = arith.constant 0 : i32
    return %c0_i32, %c0_i32_0 : i32, i32
  }
  func.func @transform_11(%arg0: i32, %arg1: memref<1xi32, #tpu.memory_space<smem>>) -> (i32, i32) {
    %c0_i32 = arith.constant 0 : i32
    %c0_i32_0 = arith.constant 0 : i32
    return %arg0, %c0_i32 : i32, i32
  }
}

</mosaic_0001>

<bundles_post_ra>
// kernel: tpu_custom_call.1
= control target key start
LH: loop header
LB: loop body
LE: loop exit
PB: predicated region body
PF: predicated region fallthrough
CT: control target
= control target key end

     0   :  { %s1306_s0 = inlined_call_operand.<no memory space> [shape: s32[1], index: 0, kind: input, shape index: {}]   ;;  %s1307_s1 = inlined_call_operand.vmem [shape: f32[2,8,32], index: 1, kind: input, shape index: {}]   ;;  %s1308_s2 = inlined_call_operand.vmem [shape: f32[8,2,1], index: 2, kind: input, shape index: {}]   ;;  %s1309_s3 = inlined_call_operand.hbm [shape: f32[32,192], index: 3, kind: input, shape index: {}]   ;;  %s1310_s4 = inlined_call_operand.vmem [shape: f32[1,192], index: 4, kind: input, shape index: {}]   ;;  %s1311_s5 = inlined_call_operand.hbm [shape: f32[32,96], index: 5, kind: input, shape index: {}]   ;;  %s1312_s6 = inlined_call_operand.hbm [shape: f32[32,96], index: 6, kind: input, shape index: {}]   ;;  %s1313_s7 = inlined_call_operand.vmem [shape: f32[1,32], index: 7, kind: input, shape index: {}]   ;;  %s1314_s8 = inlined_call_operand.vmem [shape: f32[1,32], index: 8, kind: input, shape index: {}]   ;;  %s1315_s9 = inlined_call_operand.vmem [shape: f32[1,32], index: 9, kind: input, shape index: {}]   ;;  %s1316_s10 = inlined_call_operand.vmem [shape: f32[1,32], index: 10, kind: input, shape index: {}]   ;;  %s1317_s11 = inlined_call_operand.<no memory space> [shape: f32[1,1], index: 11, kind: input, shape index: {}]   ;;  %s1318_s12 = inlined_call_operand.vmem [shape: f32[2,1], index: 12, kind: output, shape index: {}]  }
   0x1   :  { %v18_v0 = vstv %s1317_s11 }
   0x2   :  { %19 = vst [vmem:[#allocation6] sm:$0x1] %v18_v0 }
   0x3   :  { %20 = vsyncpa [#allocation8], 0 }
   0x4   :  { %21 = vsyncpa [#allocation10], 0  ;;  %s45_s25 = sshll.u32 %s1311_s5, 4  ;;  %s925_s26 = smov [#allocation9]   ;;  %s46_s25 = int_to_ptr.hbm [resolvable:$true] %s45_s25 }
   0x5   :  { %s47_s27 = sshll.u32 %s925_s26, 4  ;;  %s30_s30 = sshll.u32 %s1309_s3, 4  ;;  %s48_s27 = int_to_ptr.vmem [resolvable:$true] %s47_s27  ;;  %s31_s30 = int_to_ptr.hbm [resolvable:$true] %s30_s30 }
   0x6   :  { %s926_s13 = smov 128   ;;  %s927_s14 = smov 8  }
   0x7   :  { %53 = dma.hbm_to_vmem [thread:$0]  %s46_s25, 512, %s48_s27, [#allocation10], %s926_s13, %s926_s13, %s927_s14  }
   0x8   :  { %s928_s11 = smov [#allocation7]   ;;  %s929_s16 = smov 256  }
   0x9   :  { %s32_s15 = sshll.u32 %s928_s11, 4  ;;  %s930_s17 = smov 16   ;;  %s33_s15 = int_to_ptr.vmem [resolvable:$true] %s32_s15 }
   0xa   :  { %38 = dma.hbm_to_vmem [thread:$0]  %s31_s30, 1024, %s33_s15, [#allocation8], %s929_s16, %s929_s16, %s930_s17  }
   0xb   :  { %s58_s19 = sshll.u32 %s1312_s6, 4  ;;  %s931_s20 = smov [#allocation11]   ;;  %s59_s19 = int_to_ptr.hbm [resolvable:$true] %s58_s19 }
   0xc   :  { %s60_s21 = sshll.u32 %s931_s20, 4  ;;  %s61_s21 = int_to_ptr.vmem [resolvable:$true] %s60_s21 }
   0xd   :  { %66 = dma.hbm_to_vmem [thread:$0]  %s59_s19, 512, %s61_s21, [#allocation10], %s926_s13, %s926_s13, %s927_s14  }
   0xe   :  { %901 = dma.done.wait [#allocation8], 1024  }
   0xf   :  { %902 = vsyncadd [#allocation8], 4294966272 }
  0x10   :  { %903 = dma.done.wait [#allocation10], 1024  }
  0x11   :  { %904 = vsyncadd [#allocation10], 4294966272  ;;  %v1015_v1 = vld [vmem:[#allocation9] sm:$0xff]  ;;  %v1017_v2 = vld [vmem:[#allocation9 + $0x8] sm:$0xff]  ;;  %vm104_vm0 = vcmask 261120   ;;  %vm163_vm1 = vcmask 778240  }
  0x12   :  { %v1019_v3 = vld [vmem:[#allocation9 + $0x10] sm:$0xff]  ;;  %v1021_v4 = vld [vmem:[#allocation9 + $0x18] sm:$0xff]  ;;  %v1023_v5 = vld [vmem:[#allocation11] sm:$0xff]  ;;  %vm174_vm2 = vcmask 1040384   ;;  %vm179_vm3 = vcmask 1042434   ;;  %vm176_vm4 = vcmask 1041409  }
  0x13   :  { %v1025_v6 = vld [vmem:[#allocation11 + $0x8] sm:$0xff]  ;;  %v1027_v7 = vld [vmem:[#allocation11 + $0x10] sm:$0xff]  ;;  %v1029_v8 = vld [vmem:[#allocation11 + $0x18] sm:$0xff]  ;;  %vm182_vm5 = vcmask 1043459   ;;  %vm185_vm6 = vcmask 1044484   ;;  %vm188_vm7 = vcmask 1045509  }
  0x14   :  { %v1034_v9 = vld [vmem:[%s1313_s7] sm:$0x1]  ;;  %v95_v12 = vld [vmem:[#allocation7 + $0x30] sm:$0xff]  ;;  %v94_v13 = vld [vmem:[#allocation7 + $0x28] sm:$0xff]  ;;  %vm191_vm8 = vcmask 1046534   ;;  %vm194_vm9 = vcmask 1046528  }
  0x15   :  { %v1039_v10 = vld [vmem:[%s1314_s8] sm:$0x1]  ;;  %120 = vmatpush.msra.mxu0 %v95_v12  ;;  %v93_v14 = vld [vmem:[#allocation7 + $0x20] sm:$0xff]  ;;  %v91_v16 = vld [vmem:[#allocation7 + $0x10] sm:$0xff]  ;;  %286 = vmatpush.msra.mxu2 %v95_v12  ;;  %p720_p0 = scmp.le.s32.totalorder %s1306_s0, 0 }
  0x16   :  { %v96_v11 = vld [vmem:[#allocation7 + $0x38] sm:$0xff]  ;;  %v90_v17 = vld [vmem:[#allocation7 + $0x8] sm:$0xff]  ;;  %v89_v18 = vld [vmem:[#allocation7] sm:$0xff]  ;;  %s1215_s29 = smov (!%p720_p0), 0  }
  0x17   :  { %140 = vmatpush.msra.mxu1 %v96_v11  ;;  %v92_v15 = vld [vmem:[#allocation7 + $0x18] sm:$0xff]  ;;  %306 = vmatpush.msra.mxu3 %v96_v11  ;;  %v717_v20 = vld [vmem:[%s1307_s1 + $0x8] sm:$0xff] }
  0x18   :  { %121 = vmatpush.msra.mxu0 %v93_v14  ;;  %287 = vmatpush.msra.mxu2 %v93_v14  ;;  %v98_v19 = vld [vmem:[%s1307_s1] sm:$0xff]  ;;  %s932_s1 = smov 32  }
  0x19   :  { %141 = vmatpush.msra.mxu1 %v94_v13  ;;  %307 = vmatpush.msra.mxu3 %v94_v13  ;;  %v1054_v21 = vld [vmem:[%s1310_s4] sm:$0x3] }
  0x1a   :  { %122 = vmatpush.msra.mxu0 %v91_v16  ;;  %288 = vmatpush.msra.mxu2 %v91_v16  ;;  %v101_v22 = vperm.slane %v1054_v21, 1  ;;  %v100_v23 = vperm.slane %v1054_v21, 0 }
  0x1b   :  { %142 = vmatpush.msra.mxu1 %v92_v15  ;;  %308 = vmatpush.msra.mxu3 %v92_v15 }
  0x1c   :  { %123 = vmatpush.msra.mxu0 %v89_v18  ;;  %289 = vmatpush.msra.mxu2 %v89_v18 }
  0x1d   :  { %143 = vmatpush.msra.mxu1 %v90_v17  ;;  %715 = vmatmul.msk.f32.vlgmr.msra.gmra.mxu0 %vm104_vm0, %v98_v19 }
  0x1e   :  { %716 = vmatmul.msk.f32.vlgmr.msra.gmra.mxu1 %vm104_vm0, %v98_v19  ;;  %309 = vmatpush.msra.mxu3 %v90_v17 }
  0x1f   :  { %719 = vmatmul.msk.f32.vlgmr.msra.gmra.mxu3 %vm104_vm0, %v717_v20  ;;  %718 = vmatmul.msk.f32.vlgmr.msra.gmra.mxu2 %vm104_vm0, %v717_v20 }
  0x9a   :  { %v125_v25 = vpop.f32.mrf.mxu0 }
  0x9b   :  { %v145_v24 = vpop.f32.mrf.mxu1  ;;  %v1060_v27 = vadd.f32 %v125_v25, %v100_v23 }
  0x9c   :  { %v146_v26 = vadd.f32 %v145_v24, %v101_v22 }
  0x9d   :  { %v149_v29 = vrot.slane %v1060_v27, 1  ;;  %v150_v30 = vrot.slane %v1060_v27, 2  ;;  %v151_v31 = vrot.slane %v1060_v27, 3  ;;  %164 = vst.msk [vmem:[#allocation2] sm:$0x1] %vm163_vm1, %v1060_v27  ;;  %v152_v32 = vrot.slane %v1060_v27, 4 }
  0x9e   :  { %v1062_v28 = vrot.slane %v146_v26, 7  ;;  %v153_v33 = vrot.slane %v1060_v27, 5  ;;  %v154_v37 = vrot.slane %v1060_v27, 6  ;;  %v155_v41 = vrot.slane %v1060_v27, 7 }
  0x9f   :  { %165 = vst.msk [vmem:[#allocation2 + $0x2] sm:$0x1] %vm163_vm1, %v149_v29 }
  0xa0   :  { %v175_v34 = vsel %vm174_vm2, %v1060_v27, %v1062_v28  ;;  %v180_v35 = vsel %vm179_vm3, %v1060_v27, %v1062_v28  ;;  %v177_v36 = vsel %vm176_vm4, %v1060_v27, %v1062_v28  ;;  %166 = vst.msk [vmem:[#allocation2 + $0x4] sm:$0x1] %vm163_vm1, %v150_v30  ;;  %v183_v47 = vsel %vm182_vm5, %v1060_v27, %v1062_v28 }
  0xa1   :  { %v197_v38 = vperm.slane %v175_v34, 0  ;;  %v181_v39 = vrot.slane %v180_v35, 2  ;;  %v178_v40 = vrot.slane %v177_v36, 1  ;;  %167 = vst.msk [vmem:[#allocation2 + $0x6] sm:$0x1] %vm163_vm1, %v151_v31  ;;  %v198_v46 = vperm.slane %v175_v34, 1 }
  0xa2   :  { %168 = vst.msk [vmem:[#allocation2 + $0x8] sm:$0x1] %vm163_vm1, %v152_v32  ;;  %v291_v44 = vpop.f32.mrf.mxu2  ;;  %v186_v54 = vsel %vm185_vm6, %v1060_v27, %v1062_v28  ;;  %v184_v56 = vrot.slane %v183_v47, 3  ;;  %v189_v63 = vsel %vm188_vm7, %v1060_v27, %v1062_v28  ;;  %v192_v12 = vsel %vm191_vm8, %v1060_v27, %v1062_v28  ;;  %v311_v15 = vpop.f32.mrf.mxu3 }
  0xa3   :  { %213 = vrot.lane.b32.xlu0 %v197_v38, %s932_s1  ;;  %v201_v42 = vperm.slane %v181_v39, 0  ;;  %v199_v43 = vperm.slane %v178_v40, 0  ;;  %169 = vst.msk [vmem:[#allocation2 + $0xa] sm:$0x1] %vm163_vm1, %v153_v33  ;;  %v1092_v45 = vadd.f32 %v291_v44, %v100_v23  ;;  %v202_v51 = vperm.slane %v181_v39, 1 }
  0xa4   :  { %170 = vst.msk [vmem:[#allocation2 + $0xc] sm:$0x1] %vm163_vm1, %v154_v37  ;;  %v200_v52 = vperm.slane %v178_v40, 1  ;;  %v187_v59 = vrot.slane %v186_v54, 4  ;;  %v203_v60 = vperm.slane %v184_v56, 0  ;;  %v204_v62 = vperm.slane %v184_v56, 1 }
  0xa5   :  { %221 = vrot.lane.b32.xlu2 %v201_v42, %s932_s1  ;;  %217 = vrot.lane.b32.xlu1 %v199_v43, %s932_s1  ;;  %171 = vst.msk [vmem:[#allocation2 + $0xe] sm:$0x1] %vm163_vm1, %v155_v41  ;;  %v315_v48 = vrot.slane %v1092_v45, 1  ;;  %v316_v49 = vrot.slane %v1092_v45, 2  ;;  %v317_v50 = vrot.slane %v1092_v45, 3  ;;  %v318_v53 = vrot.slane %v1092_v45, 4 }
  0xa6   :  { %329 = vst.msk [vmem:[#allocation2 + $0x1] sm:$0x1] %vm163_vm1, %v1092_v45  ;;  %v319_v55 = vrot.slane %v1092_v45, 5  ;;  %v320_v57 = vrot.slane %v1092_v45, 6  ;;  %v321_v58 = vrot.slane %v1092_v45, 7  ;;  %v205_v61 = vperm.slane %v187_v59, 0 }
  0xa7   :  { %330 = vst.msk [vmem:[#allocation2 + $0x3] sm:$0x1] %vm163_vm1, %v315_v48  ;;  %v190_v0 = vrot.slane %v189_v63, 5  ;;  %v206_v11 = vperm.slane %v187_v59, 1  ;;  %v195_v16 = vsel %vm194_vm9, %v1062_v28, %v1060_v27  ;;  %v193_v17 = vrot.slane %v192_v12, 6 }
  0xa8   :  { %331 = vst.msk [vmem:[#allocation2 + $0x5] sm:$0x1] %vm163_vm1, %v316_v49  ;;  %v312_v18 = vadd.f32 %v311_v15, %v101_v22  ;;  %v196_v19 = vrot.slane %v195_v16, 7 }
  0xa9   :  { %332 = vst.msk [vmem:[#allocation2 + $0x7] sm:$0x1] %vm163_vm1, %v317_v50  ;;  %v208_v13 = vperm.slane %v190_v0, 1  ;;  %v207_v14 = vperm.slane %v190_v0, 0  ;;  %v209_v20 = vperm.slane %v193_v17, 0  ;;  %v210_v25 = vperm.slane %v193_v17, 1 }
  0xaa   :  { %333 = vst.msk [vmem:[#allocation2 + $0x9] sm:$0x1] %vm163_vm1, %v318_v53  ;;  %v338_v23 = vrot.slane %v312_v18, 7  ;;  %v211_v24 = vperm.slane %v196_v19, 0  ;;  %v212_v27 = vperm.slane %v196_v19, 1 }
  0xab   :  { %215 = vrot.lane.b32.xlu0 %v198_v46, %s932_s1  ;;  %334 = vst.msk [vmem:[#allocation2 + $0xb] sm:$0x1] %vm163_vm1, %v319_v55 }
  0xac   :  { %335 = vst.msk [vmem:[#allocation2 + $0xd] sm:$0x1] %vm163_vm1, %v320_v57  ;;  %v339_v26 = vsel %vm174_vm2, %v1092_v45, %v338_v23  ;;  %v340_v21 = vsel %vm176_vm4, %v1092_v45, %v338_v23  ;;  %v342_v22 = vsel %vm179_vm3, %v1092_v45, %v338_v23  ;;  %v344_v35 = vsel %vm182_vm5, %v1092_v45, %v338_v23 }
  0xad   :  { %223 = vrot.lane.b32.xlu2 %v202_v51, %s932_s1  ;;  %219 = vrot.lane.b32.xlu1 %v200_v52, %s932_s1  ;;  %336 = vst.msk [vmem:[#allocation2 + $0xf] sm:$0x1] %vm163_vm1, %v321_v58  ;;  %v355_v28 = vperm.slane %v339_v26, 1  ;;  %v354_v29 = vperm.slane %v339_v26, 0  ;;  %v341_v30 = vrot.slane %v340_v21, 1  ;;  %v343_v31 = vrot.slane %v342_v22, 2 }
  0xae   :  { %v345_v36 = vrot.slane %v344_v35, 3  ;;  %v346_v38 = vsel %vm185_vm6, %v1092_v45, %v338_v23  ;;  %v348_v41 = vsel %vm188_vm7, %v1092_v45, %v338_v23  ;;  %v350_v48 = vsel %vm191_vm8, %v1092_v45, %v338_v23 }
  0xaf   :  { %v356_v32 = vperm.slane %v341_v30, 0  ;;  %v358_v33 = vperm.slane %v343_v31, 0  ;;  %v357_v34 = vperm.slane %v341_v30, 1  ;;  %v359_v37 = vperm.slane %v343_v31, 1 }
  0xb0   :  { %v361_v39 = vperm.slane %v345_v36, 1  ;;  %v360_v40 = vperm.slane %v345_v36, 0  ;;  %v347_v42 = vrot.slane %v346_v38, 4  ;;  %v349_v43 = vrot.slane %v348_v41, 5 }
  0xb1   :  { %v351_v49 = vrot.slane %v350_v48, 6  ;;  %v352_v51 = vsel %vm194_vm9, %v338_v23, %v1092_v45 }
  0xb2   :  { %v362_v44 = vperm.slane %v347_v42, 0  ;;  %v364_v46 = vperm.slane %v349_v43, 0  ;;  %v363_v47 = vperm.slane %v347_v42, 1  ;;  %v365_v50 = vperm.slane %v349_v43, 1 }
  0xb3   :  { %225 = vrot.lane.b32.xlu0 %v203_v60, %s932_s1  ;;  %v367_v52 = vperm.slane %v351_v49, 1  ;;  %v366_v53 = vperm.slane %v351_v49, 0  ;;  %v353_v54 = vrot.slane %v352_v51, 7  ;;  %v1207_v51 = vmov 0.0  }
  0xb5   :  { %229 = vrot.lane.b32.xlu2 %v205_v61, %s932_s1  ;;  %227 = vrot.lane.b32.xlu1 %v204_v62, %s932_s1  ;;  %v368_v55 = vperm.slane %v353_v54, 0  ;;  %v369_v56 = vperm.slane %v353_v54, 1 }
  0xbb   :  { %231 = vrot.lane.b32.xlu0 %v206_v11, %s932_s1 }
  0xbd   :  { %235 = vrot.lane.b32.xlu2 %v208_v13, %s932_s1  ;;  %233 = vrot.lane.b32.xlu1 %v207_v14, %s932_s1 }
  0xc3   :  { %237 = vrot.lane.b32.xlu0 %v209_v20, %s932_s1 }
  0xc5   :  { %241 = vrot.lane.b32.xlu2 %v211_v24, %s932_s1  ;;  %239 = vrot.lane.b32.xlu1 %v210_v25, %s932_s1 }
  0xcb   :  { %243 = vrot.lane.b32.xlu0 %v212_v27, %s932_s1 }
  0xcd   :  { %372 = vrot.lane.b32.xlu2 %v355_v28, %s932_s1  ;;  %370 = vrot.lane.b32.xlu1 %v354_v29, %s932_s1 }
  0xd3   :  { %374 = vrot.lane.b32.xlu0 %v356_v32, %s932_s1 }
  0xd5   :  { %378 = vrot.lane.b32.xlu2 %v358_v33, %s932_s1  ;;  %376 = vrot.lane.b32.xlu1 %v357_v34, %s932_s1 }
  0xdb   :  { %380 = vrot.lane.b32.xlu0 %v359_v37, %s932_s1 }
  0xdd   :  { %384 = vrot.lane.b32.xlu2 %v361_v39, %s932_s1  ;;  %382 = vrot.lane.b32.xlu1 %v360_v40, %s932_s1 }
  0xe3   :  { %386 = vrot.lane.b32.xlu0 %v362_v44, %s932_s1 }
  0xe5   :  { %390 = vrot.lane.b32.xlu2 %v364_v46, %s932_s1  ;;  %388 = vrot.lane.b32.xlu1 %v363_v47, %s932_s1 }
  0xeb   :  { %392 = vrot.lane.b32.xlu0 %v365_v50, %s932_s1 }
  0xed   :  { %396 = vrot.lane.b32.xlu2 %v367_v52, %s932_s1  ;;  %394 = vrot.lane.b32.xlu1 %v366_v53, %s932_s1  ;;  %v1209_v52 = vmov 0.0  }
  0xf3   :  { %398 = vrot.lane.b32.xlu0 %v368_v55, %s932_s1 }
  0xf5   :  { %400 = vrot.lane.b32.xlu1 %v369_v56, %s932_s1 }
  0xff   :  { %v222_v57 = vpop.permute.xlu2 %221 }
 0x107   :  { %v224_v58 = vpop.permute.xlu2 %223 }
 0x108   :  { %v247_v59 = vsel %vm104_vm0, %v222_v57, %v224_v58 }
 0x109   :  { %263 = vst.msk [vmem:[#allocation3 + $0x4] sm:$0x1] %vm163_vm1, %v247_v59 }
 0x10f   :  { %v230_v61 = vpop.permute.xlu2 %229 }
 0x115   :  { %v214_v45 = vpop.permute.xlu0 %213 }
 0x117   :  { %v218_v60 = vpop.permute.xlu1 %217  ;;  %v236_v12 = vpop.permute.xlu2 %235 }
 0x11d   :  { %v216_v62 = vpop.permute.xlu0 %215 }
 0x11e   :  { %v245_v63 = vsel %vm104_vm0, %v214_v45, %v216_v62 }
 0x11f   :  { %261 = vst.msk [vmem:[#allocation3] sm:$0x1] %vm163_vm1, %v245_v63  ;;  %v220_v0 = vpop.permute.xlu1 %219  ;;  %v242_v16 = vpop.permute.xlu2 %241 }
 0x120   :  { %v246_v11 = vsel %vm104_vm0, %v218_v60, %v220_v0 }
 0x121   :  { %262 = vst.msk [vmem:[#allocation3 + $0x2] sm:$0x1] %vm163_vm1, %v246_v11 }
 0x125   :  { %v226_v13 = vpop.permute.xlu0 %225 }
 0x127   :  { %v228_v14 = vpop.permute.xlu1 %227  ;;  %v373_v24 = vpop.permute.xlu2 %372 }
 0x128   :  { %v248_v15 = vsel %vm104_vm0, %v226_v13, %v228_v14 }
 0x129   :  { %264 = vst.msk [vmem:[#allocation3 + $0x6] sm:$0x1] %vm163_vm1, %v248_v15 }
 0x12d   :  { %v232_v17 = vpop.permute.xlu0 %231 }
 0x12e   :  { %v249_v18 = vsel %vm104_vm0, %v230_v61, %v232_v17 }
 0x12f   :  { %265 = vst.msk [vmem:[#allocation3 + $0x8] sm:$0x1] %vm163_vm1, %v249_v18  ;;  %v234_v19 = vpop.permute.xlu1 %233  ;;  %v379_v22 = vpop.permute.xlu2 %378 }
 0x130   :  { %v250_v20 = vsel %vm104_vm0, %v234_v19, %v236_v12 }
 0x131   :  { %266 = vst.msk [vmem:[#allocation3 + $0xa] sm:$0x1] %vm163_vm1, %v250_v20 }
 0x135   :  { %v238_v23 = vpop.permute.xlu0 %237 }
 0x137   :  { %v240_v25 = vpop.permute.xlu1 %239  ;;  %v385_v33 = vpop.permute.xlu2 %384 }
 0x138   :  { %v251_v26 = vsel %vm104_vm0, %v238_v23, %v240_v25 }
 0x139   :  { %267 = vst.msk [vmem:[#allocation3 + $0xc] sm:$0x1] %vm163_vm1, %v251_v26 }
 0x13d   :  { %v244_v27 = vpop.permute.xlu0 %243 }
 0x13e   :  { %v252_v28 = vsel %vm104_vm0, %v242_v16, %v244_v27 }
 0x13f   :  { %268 = vst.msk [vmem:[#allocation3 + $0xe] sm:$0x1] %vm163_vm1, %v252_v28  ;;  %v371_v29 = vpop.permute.xlu1 %370  ;;  %v391_v38 = vpop.permute.xlu2 %390 }
 0x140   :  { %v402_v21 = vsel %vm104_vm0, %v371_v29, %v373_v24 }
 0x141   :  { %418 = vst.msk [vmem:[#allocation3 + $0x1] sm:$0x1] %vm163_vm1, %v402_v21 }
 0x145   :  { %v375_v30 = vpop.permute.xlu0 %374 }
 0x147   :  { %v377_v31 = vpop.permute.xlu1 %376  ;;  %v397_v44 = vpop.permute.xlu2 %396 }
 0x148   :  { %v403_v32 = vsel %vm104_vm0, %v375_v30, %v377_v31 }
 0x149   :  { %419 = vst.msk [vmem:[#allocation3 + $0x3] sm:$0x1] %vm163_vm1, %v403_v32 }
 0x14d   :  { %v381_v34 = vpop.permute.xlu0 %380 }
 0x14e   :  { %v404_v35 = vsel %vm104_vm0, %v379_v22, %v381_v34 }
 0x14f   :  { %420 = vst.msk [vmem:[#allocation3 + $0x5] sm:$0x1] %vm163_vm1, %v404_v35  ;;  %v383_v36 = vpop.permute.xlu1 %382 }
 0x150   :  { %v405_v37 = vsel %vm104_vm0, %v383_v36, %v385_v33 }
 0x151   :  { %421 = vst.msk [vmem:[#allocation3 + $0x7] sm:$0x1] %vm163_vm1, %v405_v37 }
 0x155   :  { %v387_v39 = vpop.permute.xlu0 %386 }
 0x157   :  { %v389_v40 = vpop.permute.xlu1 %388 }
 0x158   :  { %v406_v41 = vsel %vm104_vm0, %v387_v39, %v389_v40 }
 0x159   :  { %422 = vst.msk [vmem:[#allocation3 + $0x9] sm:$0x1] %vm163_vm1, %v406_v41 }
 0x15d   :  { %v393_v42 = vpop.permute.xlu0 %392 }
 0x15e   :  { %v407_v43 = vsel %vm104_vm0, %v391_v38, %v393_v42 }
 0x15f   :  { %423 = vst.msk [vmem:[#allocation3 + $0xb] sm:$0x1] %vm163_vm1, %v407_v43  ;;  %v395_v46 = vpop.permute.xlu1 %394 }
 0x160   :  { %v408_v47 = vsel %vm104_vm0, %v395_v46, %v397_v44 }
 0x161   :  { %424 = vst.msk [vmem:[#allocation3 + $0xd] sm:$0x1] %vm163_vm1, %v408_v47 }
 0x165   :  { %v399_v48 = vpop.permute.xlu0 %398  ;;  %708 = sbr.rel (%p720_p0) target bundleno = 954 (0x3ba), region = 82 }
 0x167   :  { %v401_v49 = vpop.permute.xlu1 %400 }
 0x168   :  { %v409_v50 = vsel %vm104_vm0, %v399_v48, %v401_v49 }
 0x169   :  { %425 = vst.msk [vmem:[#allocation3 + $0xf] sm:$0x1] %vm163_vm1, %v409_v50 }
 0x16a   :  { %v1211_v53 = vmov 0.0   ;;  %v1213_v54 = vmov 0.0  }
 0x16b LB: > { %469 = vmatpush.msra.mxu0 %v1021_v4  ;;  %572 = vmatpush.msra.mxu1 %v1029_v8  ;;  %s933_s30 = smov 96   ;;  %v518_v55 = vperm.slane %v1034_v9, 0  ;;  %s934_s13 = smov 64   ;;  %v621_v56 = vperm.slane %v1039_v10, 0  ;;  %v935_v59 = vmov 0   ;;  %s915_s29 = sphi %s1215_s29, %s440_s29   ;;  %v911_v54 = vphi %v1213_v54, %v1320_v54   ;;  %v907_v53 = vphi %v1211_v53, %v1319_v53  }
 0x16c   : > { %453 = vrot.lane.b32.xlu0 %v911_v54, %s933_s30  ;;  %784 = vset.pattern.permute.xlu2 %v935_v59  ;;  %s721_s15 = sadd.s32 4294967295, %s1306_s0  ;;  %s936_s17 = smov 32  }
 0x16d   : > { %470 = vmatpush.msra.mxu0 %v1019_v3  ;;  %573 = vmatpush.msra.mxu1 %v1027_v7  ;;  %s446_s16 = ssub.s32 %s721_s15, %s915_s29  ;;  %s722_s21 = sshll.u32 %s915_s29, 1 }
 0x16e   : > { %519 = vrot.lane.b32.xlu1 %v518_v55, %s934_s13  ;;  %785 = vset.pattern.permute.xlu0 %v935_v59  ;;  %s726_s18 = sshll.u32 %s446_s16, 1  ;;  %s448_s3 = scalar_lea.vmem [#allocation2], %s722_s21 }
 0x16f   : > { %471 = vmatpush.msra.mxu0 %v1017_v2  ;;  %574 = vmatpush.msra.mxu1 %v1025_v6  ;;  %s553_s20 = scalar_lea.vmem %s1308_s2, %s726_s18  ;;  %v449_v12 = vld [vmem:[%s448_s3] sm:$0x3]  ;;  %s551_s6 = scalar_lea.vmem [#allocation3], %s726_s18 }
 0x170   : > { %783 = vset.pattern.permute.xlu1 %v935_v59  ;;  %v554_v11 = vld [vmem:[%s553_s20] sm:$0x3]  ;;  %s450_s7 = scalar_lea.vmem %s1308_s2, %s722_s21  ;;  %s440_s29 = sadd.s32 1, %s915_s29  }
 0x171   : > { %472 = vmatpush.msra.mxu0 %v1015_v1  ;;  %575 = vmatpush.msra.mxu1 %v1023_v5  ;;  %v552_v15 = vld [vmem:[%s551_s6] sm:$0x3]  ;;  %p439_p1 = scmp.ge.s32.totalorder %s440_s29, %s1306_s0 }
 0x172   : > { %v451_v47 = vld [vmem:[%s450_s7] sm:$0x3] }
 0x174   : > { %556 = vrot.lane.b32.xlu0 %v907_v53, %s933_s30 }
 0x176   : > { %622 = vrot.lane.b32.xlu1 %v621_v56, %s934_s13 }
 0x1de   : > { %v454_v57 = vpop.permute.xlu0 %453 }
 0x1df   : > { %723 = vmatmul.msk.f32.vlgmr.msra.gmra.mxu0 %vm104_vm0, %v454_v57 }
 0x1e0   : > { %v520_v45 = vpop.permute.xlu1 %519 }
 0x1e6   : > { %v557_v58 = vpop.permute.xlu0 %556 }
 0x1e7   : > { %727 = vmatmul.msk.f32.vlgmr.msra.gmra.mxu1 %vm104_vm0, %v557_v58 }
 0x1e8   : > { %v623_v62 = vpop.permute.xlu1 %622 }
 0x25c   : > { %v474_v60 = vpop.f32.mrf.mxu0 }
 0x25d   : > { %v522_v61 = vadd.f32 %v520_v45, %v474_v60  ;;  %v1258_v13 = vadd.f32 %v474_v60, %v449_v12 }
 0x25f   : > { %524 = vrot.lane.b32.xlu2 %v522_v61, %s934_s13  ;;  %v724_v14 = vmul.f32 -1.442695, %v1258_v13  ;;  %v497_v45 = vsub.f32 0.0, %v1258_v13 }
 0x261   : > { %786 = vpow2.f32 %v724_v14  ;;  %v725_v60 = vmul.f32 -1.442695, %v497_v45 }
 0x264   : > { %v577_v63 = vpop.f32.mrf.mxu1 }
 0x265   : > { %v625_v0 = vadd.f32 %v623_v62, %v577_v63  ;;  %v1261_v16 = vadd.f32 %v577_v63, %v552_v15 }
 0x267   : > { %627 = vrot.lane.b32.xlu2 %v625_v0, %s934_s13  ;;  %v728_v17 = vmul.f32 -1.442695, %v1261_v16  ;;  %v787_v18 = vpop.eup %786  ;;  %v600_v61 = vsub.f32 0.0, %v1261_v16 }
 0x268   : > { %v481_v19 = vadd.f32 1.0, %v787_v18 }
 0x269   : > { %788 = vpow2.f32 %v728_v17  ;;  %v729_v62 = vmul.f32 -1.442695, %v600_v61 }
 0x26a   : > { %790 = vrcp.f32 %v481_v19  ;;  %v493_v30 = vand.u32 2147483648, %v481_v19  ;;  %vm487_vm11 = vweird.f32 %v481_v19  ;;  %v491_v31 = vand.u32 2147483647, %v481_v19 }
 0x26c   : > { %v494_v34 = vor.u32 1.1754944e-38, %v493_v30  ;;  %vm492_vm13 = vcmp.eq.f32.partialorder %v491_v31, 8.507059e+37 }
 0x26f   : > { %540 = vrot.lane.b32.xlu2 %v911_v54, %s936_s17  ;;  %v789_v20 = vpop.eup %788 }
 0x270   : > { %v584_v23 = vadd.f32 1.0, %v789_v20  ;;  %v791_v24 = vpop.eup %790 }
 0x271   : > { %v483_v25 = vmul.f32 %v791_v24, %v481_v19  ;;  %vm488_vm10 = vweird.f32 %v791_v24 }
 0x272   : > { %792 = vrcp.f32 %v584_v23  ;;  %vm489_vm12 = vmor %vm487_vm11, %vm488_vm10  ;;  %v596_v39 = vand.u32 2147483648, %v584_v23  ;;  %vm590_vm15 = vweird.f32 %v584_v23  ;;  %v594_v40 = vand.u32 2147483647, %v584_v23 }
 0x273   : > { %v484_v26 = vsub.f32 1.0, %v483_v25 }
 0x274   : > { %v597_v42 = vor.u32 1.1754944e-38, %v596_v39  ;;  %vm595_vm2 = vcmp.eq.f32.partialorder %v594_v40, 8.507059e+37 }
 0x275   : > { %v485_v28 = vmul.f32 %v791_v24, %v484_v26 }
 0x277   : > { %639 = vperm.xlu2 %784, %v554_v11   ;;  %v486_v21 = vadd.f32 %v791_v24, %v485_v28 }
 0x278   : > { %v793_v27 = vpop.eup %792 }
 0x279   : > { %v586_v29 = vmul.f32 %v793_v27, %v584_v23  ;;  %v490_v32 = vsel %vm489_vm12, %v791_v24, %v486_v21  ;;  %vm591_vm14 = vweird.f32 %v793_v27 }
 0x27a   : > { %v495_v36 = vsel %vm492_vm13, %v494_v34, %v490_v32  ;;  %vm592_vm1 = vmor %vm590_vm15, %vm591_vm14 }
 0x27b   : > { %v587_v22 = vsub.f32 1.0, %v586_v29 }
 0x27d   : > { %v588_v33 = vmul.f32 %v793_v27, %v587_v22 }
 0x27f   : > { %v589_v38 = vadd.f32 %v793_v27, %v588_v33 }
 0x281   : > { %v593_v41 = vsel %vm592_vm1, %v793_v27, %v589_v38 }
 0x282   : > { %v598_v44 = vsel %vm595_vm2, %v597_v42, %v593_v41 }
 0x2b9   : > { %v525_v35 = vpop.permute.xlu2 %524 }
 0x2ba   : > { %v527_v37 = vmul.f32 %v525_v35, %v495_v36 }
 0x2bc   : > { %529 = vrot.lane.b32.xlu0 %v527_v37, %s934_s13 }
 0x2c1   : > { %v628_v43 = vpop.permute.xlu2 %627 }
 0x2c2   : > { %v630_v46 = vmul.f32 %v628_v43, %v598_v44 }
 0x2c4   : > { %632 = vrot.lane.b32.xlu1 %v630_v46, %s934_s13  ;;  %643 = vrot.lane.b32.xlu0 %v907_v53, %s936_s17 }
 0x2c9   : > { %v541_v52 = vpop.permute.xlu2 %540 }
 0x2cc   : > { %536 = vperm.xlu1 %783, %v451_v47  }
 0x2d1   : > { %v640_v36 = vpop.permute.xlu2 %639 }
 0x32e   : > { %v530_v48 = vpop.permute.xlu0 %529 }
 0x32f   : > { %v532_v49 = vadd.f32 %v530_v48, %v449_v12 }
 0x331   : > { %794 = vtanh.f32 %v532_v49 }
 0x336   : > { %v633_v50 = vpop.permute.xlu1 %632  ;;  %v644_v57 = vpop.permute.xlu0 %643 }
 0x337   : > { %v795_v51 = vpop.eup %794  ;;  %v635_v55 = vadd.f32 %v633_v50, %v552_v15 }
 0x338   : > { %v543_v56 = vsub.f32 %v795_v51, %v541_v52 }
 0x339   : > { %796 = vtanh.f32 %v635_v55 }
 0x33a   : > { %545 = vrot.lane.b32.xlu0 %v543_v56, %s933_s30  ;;  %798 = vpow2.f32 %v725_v60 }
 0x33b   : > { %800 = vpow2.f32 %v729_v62 }
 0x33e   : > { %v537_v28 = vpop.permute.xlu1 %536 }
 0x33f   : > { %v797_v58 = vpop.eup %796 }
 0x340   : > { %v646_v59 = vsub.f32 %v797_v58, %v644_v57  ;;  %v799_v63 = vpop.eup %798 }
 0x341   : > { %v501_v0 = vadd.f32 1.0, %v799_v63  ;;  %v801_v11 = vpop.eup %800 }
 0x342   : > { %648 = vrot.lane.b32.xlu1 %v646_v59, %s933_s30  ;;  %v604_v12 = vadd.f32 1.0, %v801_v11 }
 0x343   : > { %802 = vrcp.f32 %v501_v0  ;;  %v513_v24 = vand.u32 2147483648, %v501_v0  ;;  %vm507_vm4 = vweird.f32 %v501_v0  ;;  %v511_v16 = vand.u32 2147483647, %v501_v0 }
 0x344   : > { %804 = vrcp.f32 %v604_v12  ;;  %v616_v30 = vand.u32 2147483648, %v604_v12  ;;  %vm610_vm8 = vweird.f32 %v604_v12  ;;  %v614_v32 = vand.u32 2147483647, %v604_v12 }
 0x345   : > { %v514_v27 = vor.u32 1.1754944e-38, %v513_v24  ;;  %vm512_vm6 = vcmp.eq.f32.partialorder %v511_v16, 8.507059e+37 }
 0x346   : > { %v617_v37 = vor.u32 1.1754944e-38, %v616_v30  ;;  %vm615_vm10 = vcmp.eq.f32.partialorder %v614_v32, 8.507059e+37 }
 0x349   : > { %v803_v14 = vpop.eup %802 }
 0x34a   : > { %v503_v15 = vmul.f32 %v803_v14, %v501_v0  ;;  %v805_v18 = vpop.eup %804  ;;  %vm508_vm3 = vweird.f32 %v803_v14 }
 0x34b   : > { %v606_v19 = vmul.f32 %v805_v18, %v604_v12  ;;  %vm509_vm5 = vmor %vm507_vm4, %vm508_vm3  ;;  %vm611_vm7 = vweird.f32 %v805_v18 }
 0x34c   : > { %v504_v17 = vsub.f32 1.0, %v503_v15  ;;  %vm612_vm9 = vmor %vm610_vm8, %vm611_vm7 }
 0x34d   : > { %v607_v23 = vsub.f32 1.0, %v606_v19 }
 0x34e   : > { %v505_v20 = vmul.f32 %v803_v14, %v504_v17 }
 0x34f   : > { %v608_v25 = vmul.f32 %v805_v18, %v607_v23 }
 0x350   : > { %v506_v13 = vadd.f32 %v803_v14, %v505_v20 }
 0x351   : > { %v609_v21 = vadd.f32 %v805_v18, %v608_v25 }
 0x352   : > { %v510_v26 = vsel %vm509_vm5, %v803_v14, %v506_v13 }
 0x353   : > { %v515_v29 = vsel %vm512_vm6, %v514_v27, %v510_v26  ;;  %v613_v34 = vsel %vm612_vm9, %v805_v18, %v609_v21 }
 0x354   : > { %v539_v22 = vmul.f32 %v537_v28, %v515_v29  ;;  %v618_v38 = vsel %vm615_vm10, %v617_v37, %v613_v34 }
 0x355   : > { %v642_v39 = vmul.f32 %v640_v36, %v618_v38 }
 0x3ac   : > { %v546_v31 = vpop.permute.xlu0 %545 }
 0x3ad   : > { %v548_v33 = vmul.f32 %v546_v31, %v539_v22 }
 0x3af   : > { %v549_v35 = vadd.f32 %v911_v54, %v548_v33  }
 0x3b1   : > { %v1320_v54 = vmov %v549_v35  ;;  %v1322_v52 = vmov (%p439_p1), %v549_v35 }
 0x3b4   : > { %v649_v40 = vpop.permute.xlu1 %648 }
 0x3b5   : > { %v651_v41 = vmul.f32 %v649_v40, %v642_v39  ;;  %442 = sbr.rel (!%p439_p1) target bundleno = 363 (0x16b), region = 88 }
 0x3b7   : > { %v652_v42 = vadd.f32 %v907_v53, %v651_v41  }
 0x3b9   : > { %v1319_v53 = vmov %v652_v42  ;;  %v1321_v51 = vmov (%p439_p1), %v652_v42 }
 0x3ba PF:  { %v806_v54 = vld [vmem:[%s1315_s9] ss:$0 sm:$0xff]  ;;  %s937_s0 = smov 96   ;;  %vm664_vm0 = vcmask 254976   ;;  %vm688_vm11 = vcmask 1024   ;;  %v923_v52 = vphi %v1209_v52, %v1322_v52   ;;  %v919_v51 = vphi %v1207_v51, %v1321_v51  }
 0x3bb   :  { %656 = vrot.lane.b32.xlu0 %v806_v54, %s932_s1  ;;  %v807_v43 = vld [vmem:[%s1316_s10] ss:$0 sm:$0xff] }
 0x3bc   :  { %v808_v10 = vld [vmem:[#allocation6] ss:$0 sm:$0xff] }
 0x3c3   :  { %671 = vrot.lane.b32.xlu0 %v807_v43, %s932_s1 }
 0x42d   :  { %v657_v1 = vpop.permute.xlu0 %656 }
 0x42e   :  { %v659_v2 = vmul.f32 %v923_v52, %v657_v1 }
 0x430   :  { %661 = vrot.lane.b32.xlu1 %v659_v2, %s937_s0 }
 0x435   :  { %v672_v3 = vpop.permute.xlu0 %671 }
 0x436   :  { %v674_v4 = vmul.f32 %v919_v51, %v672_v3 }
 0x438   :  { %676 = vrot.lane.b32.xlu1 %v674_v4, %s937_s0 }
 0x4a2   :  { %v662_v5 = vpop.permute.xlu1 %661 }
 0x4a3   :  { %v665_v6 = vsel %vm664_vm0, %v662_v5, 0.0 }
 0x4a4   :  { %666 = vadd.xlane.f32.xlu2 %v665_v6 }
 0x4aa   :  { %v677_v7 = vpop.permute.xlu1 %676 }
 0x4ab   :  { %v679_v8 = vsel %vm664_vm0, %v677_v7, 0.0 }
 0x4ac   :  { %680 = vadd.xlane.f32.xlu2 %v679_v8 }
 0x517   :  { %v667_v9 = vpop.xlane.xlu2 %666 }
 0x51f   :  { %v681_v53 = vpop.xlane.xlu2 %680 }
 0x520   :  { %v682_v44 = vadd.f32 %v681_v53, %v667_v9 }
 0x522   :  { %v687_v46 = vadd.f32 %v808_v10, %v682_v44 }
 0x524   :  { %689 = vst.msk [vmem:[%s1318_s12] sm:$0x3] %vm688_vm11, %v687_v46 }
 0x525   :  { %694 = vsyncpa [#allocation8], 1 }
 0x526   :  { %695 = vsyncpa [#allocation10], 1 }

</bundles_post_ra>
